<compile_context>
chip_gen: v6e
topology: v6e:2x2x1
jax: 0.10.0
libtpu: 0.0.40
codegen_flags: <defaults>
</compile_context>

<pallas_src>
import math
from functools import partial

import jax
import jax.numpy as jnp
from jax.experimental import pallas as pl
from jax.experimental.pallas import tpu as pltpu

# ---- loss hyper-parameters (module __init__ defaults) -----------------------
T = 0.01
W = 10.0
EPS = 2.0
S = (W + EPS) / (2.0 * T * (EPS + T))
C1 = W - (W + EPS) * math.log(1.0 + W / EPS)
C2 = S * T * T

LANES = 512                 # lane-dense view width (multiple of 128)
SUBLANES = 8
DEFAULT_TILE_ROWS = 1024    # 1024 x 512 x 4B = 2 MiB per f32 input tile


def _smooth_wing_kernel(preds_ref, gts_ref, out_ref, *, tile_rows):
    """One grid step = one (tile_rows, LANES) tile of the flattened input.

    Computes the element-wise piecewise loss and writes an (8, LANES) per-tile
    partial sum. The reduction is a split of the (8,128)-aligned major axis
    followed by a sum over the outermost (untiled) axis -> pure VPU adds, no
    cross-lane XLU reduce and no cross-step serial dependency.
    """
    diff = jnp.abs(gts_ref[...].astype(jnp.float32) - preds_ref[...].astype(jnp.float32))

    first_loss = S * diff * diff                                # |d| <  t
    second_loss = diff - C1 - C2                                # |d| >  w
    third_loss = (W + EPS) * jnp.log(1.0 + diff / EPS) - C2     # t <= |d| <= w

    # Branches are mutually exclusive, so the stacked-multiply-sum in the
    # PyTorch code is equivalent to a nested select.
    loss = jnp.where(diff < T, first_loss,
                     jnp.where(diff > W, second_loss, third_loss))

    out_ref[...] = jnp.sum(loss.reshape(tile_rows // SUBLANES, SUBLANES, LANES), axis=0)


def smooth_wing_loss(preds, gts, *, tile_rows=DEFAULT_TILE_ROWS):
    assert preds.shape == gts.shape, (
        f"preds shape = {preds.shape} != gts.shape = {gts.shape}")
    B = preds.shape[0]
    total = preds.size

    # Lane-dense flattened view, zero-padded to a whole number of tiles.
    rows_needed = pl.cdiv(total, LANES)
    tile_rows = min(tile_rows, max(SUBLANES, pl.cdiv(rows_needed, SUBLANES) * SUBLANES))
    num_tiles = pl.cdiv(rows_needed, tile_rows)
    padded_rows = num_tiles * tile_rows
    pad = padded_rows * LANES - total

    # Keep the input dtype through the DMA (bf16 stays bf16); upcast happens in-kernel.
    p2 = jnp.pad(preds.reshape(-1), (0, pad)).reshape(padded_rows, LANES)
    g2 = jnp.pad(gts.reshape(-1), (0, pad)).reshape(padded_rows, LANES)

    partials = pl.pallas_call(
        partial(_smooth_wing_kernel, tile_rows=tile_rows),
        out_shape=jax.ShapeDtypeStruct((num_tiles * SUBLANES, LANES), jnp.float32),
        grid_spec=pl.GridSpec(
            grid=(num_tiles,),
            in_specs=[
                pl.BlockSpec((tile_rows, LANES), lambda i: (i, 0)),
                pl.BlockSpec((tile_rows, LANES), lambda i: (i, 0)),
            ],
            out_specs=pl.BlockSpec((SUBLANES, LANES), lambda i: (i, 0)),
        ),
        compiler_params=pltpu.CompilerParams(
            # per-tile outputs are independent -> grid axis can be sharded across TCs
            dimension_semantics=("parallel",),
        ),
    )(p2, g2)

    # Tiny final cross-lane reduction + hoisted 1/B scale, in plain JAX.
    return jnp.sum(partials) / B


def _reference(preds, gts):
    """Pure-JAX reference mirroring the PyTorch forward exactly."""
    diff = jnp.abs(gts - preds).astype(jnp.float32)
    first_c = diff < T
    second_c = diff > W
    third_c = jnp.logical_not(jnp.logical_or(first_c, second_c))
    first_l = S * jnp.square(diff)
    second_l = diff - C1 - C2
    third_l = (W + EPS) * jnp.log(1.0 + diff / EPS) - C2
    loss_elements = first_l * first_c + second_l * second_c + third_l * third_c
    return jnp.mean(jnp.sum(loss_elements, axis=(2, 1)))


if __name__ == "__main__":
    key = jax.random.PRNGKey(0)

    # Case 1: small landmark-like shape (single tile, exercises zero-padding).
    k1, k2, k3, k4 = jax.random.split(key, 4)
    B, N, D = 2, 8, 32
    preds = jax.random.uniform(k1, (B, N, D), dtype=jnp.float32, minval=-12.0, maxval=12.0)
    gts = jax.random.uniform(k2, (B, N, D), dtype=jnp.float32, minval=-12.0, maxval=12.0)
    out = jax.block_until_ready(smooth_wing_loss(preds, gts))
    ref = _reference(preds, gts)
    assert jnp.allclose(out, ref, rtol=1e-5, atol=1e-5), (out, ref)

    # Case 2: exercise the multi-tile grid path with a small tile_rows override.
    B2, N2, D2 = 2, 64, 64
    preds2 = jax.random.uniform(k3, (B2, N2, D2), dtype=jnp.float32, minval=-12.0, maxval=12.0)
    gts2 = jax.random.uniform(k4, (B2, N2, D2), dtype=jnp.float32, minval=-12.0, maxval=12.0)
    out2 = jax.block_until_ready(smooth_wing_loss(preds2, gts2, tile_rows=8))
    ref2 = _reference(preds2, gts2)
    assert jnp.allclose(out2, ref2, rtol=1e-5, atol=1e-4), (out2, ref2)

    print("KERNEL_OK")
</pallas_src>

<mosaic_0001>
module attributes {stable_mosaic.version = 11 : i64} {
  func.func @_smooth_wing_kernel(%arg0: i32, %arg1: memref<8x512xf32, #tpu.memory_space<vmem>>, %arg2: memref<8x512xf32, #tpu.memory_space<vmem>>, %arg3: memref<8x512xf32, #tpu.memory_space<vmem>>) attributes {dimension_semantics = [#tpu.dimension_semantics<parallel>], iteration_bounds = array<i64: 1>, scalar_prefetch = 0 : i64, scratch_operands = 0 : i64, tpu.core_type = #tpu.core_type<tc>, window_params = [{transform_indices = @transform_0, window_bounds = array<i64: 8, 512>}, {transform_indices = @transform_1, window_bounds = array<i64: 8, 512>}, {transform_indices = @transform_2, window_bounds = array<i64: 8, 512>}]} {
    %c0 = arith.constant 0 : index
    %c0_0 = arith.constant 0 : index
    %0 = vector.load %arg2[%c0, %c0_0] : memref<8x512xf32, #tpu.memory_space<vmem>>, vector<8x512xf32>
    %c0_1 = arith.constant 0 : index
    %c0_2 = arith.constant 0 : index
    %1 = vector.load %arg1[%c0_1, %c0_2] : memref<8x512xf32, #tpu.memory_space<vmem>>, vector<8x512xf32>
    %2 = arith.subf %0, %1 : vector<8x512xf32>
    %3 = math.absf %2 : vector<8x512xf32>
    %cst = arith.constant 298.507477 : f32
    %4 = vector.broadcast %cst : f32 to vector<8x512xf32>
    %5 = arith.mulf %4, %3 : vector<8x512xf32>
    %6 = arith.mulf %5, %3 : vector<8x512xf32>
    %cst_3 = arith.constant -11.5011139 : f32
    %7 = vector.broadcast %cst_3 : f32 to vector<8x512xf32>
    %8 = arith.subf %3, %7 : vector<8x512xf32>
    %cst_4 = arith.constant 0.0298507456 : f32
    %9 = vector.broadcast %cst_4 : f32 to vector<8x512xf32>
    %10 = arith.subf %8, %9 : vector<8x512xf32>
    %cst_5 = arith.constant 2.000000e+00 : f32
    %11 = vector.broadcast %cst_5 : f32 to vector<8x512xf32>
    %12 = arith.divf %3, %11 : vector<8x512xf32>
    %cst_6 = arith.constant 1.000000e+00 : f32
    %13 = vector.broadcast %cst_6 : f32 to vector<8x512xf32>
    %14 = arith.addf %13, %12 : vector<8x512xf32>
    %15 = math.log %14 : vector<8x512xf32>
    %cst_7 = arith.constant 1.200000e+01 : f32
    %16 = vector.broadcast %cst_7 : f32 to vector<8x512xf32>
    %17 = arith.mulf %16, %15 : vector<8x512xf32>
    %cst_8 = arith.constant 0.0298507456 : f32
    %18 = vector.broadcast %cst_8 : f32 to vector<8x512xf32>
    %19 = arith.subf %17, %18 : vector<8x512xf32>
    %cst_9 = arith.constant 0.00999999977 : f32
    %20 = vector.broadcast %cst_9 : f32 to vector<8x512xf32>
    %21 = arith.cmpf olt, %3, %20 : vector<8x512xf32>
    %cst_10 = arith.constant 1.000000e+01 : f32
    %22 = vector.broadcast %cst_10 : f32 to vector<8x512xf32>
    %23 = arith.cmpf ogt, %3, %22 : vector<8x512xf32>
    %24 = arith.select %23, %10, %19 : vector<8x512xi1>, vector<8x512xf32>
    %25 = arith.select %21, %6, %24 : vector<8x512xi1>, vector<8x512xf32>
    %26 = vector.shape_cast %25 : vector<8x512xf32> to vector<1x8x512xf32>
    %cst_11 = arith.constant dense<0.000000e+00> : vector<8x512xf32>
    %27 = vector.multi_reduction <add>, %26, %cst_11 [0] : vector<1x8x512xf32> to vector<8x512xf32>
    %c0_12 = arith.constant 0 : index
    %c0_13 = arith.constant 0 : index
    %28 = vector.load %arg3[%c0_12, %c0_13] : memref<8x512xf32, #tpu.memory_space<vmem>>, vector<8x512xf32>
    tpu.vector_store %arg3[%c0_12, %c0_13], %27 {strides = array<i32>} : memref<8x512xf32, #tpu.memory_space<vmem>>, vector<8x512xf32>,
    return
  }
  func.func @transform_0(%arg0: i32) -> (i32, i32) {
    %c0_i32 = arith.constant 0 : i32
    %c0_i32_0 = arith.constant 0 : i32
    return %arg0, %c0_i32 : i32, i32
  }
  func.func @transform_1(%arg0: i32) -> (i32, i32) {
    %c0_i32 = arith.constant 0 : i32
    %c0_i32_0 = arith.constant 0 : i32
    return %arg0, %c0_i32 : i32, i32
  }
  func.func @transform_2(%arg0: i32) -> (i32, i32) {
    %c0_i32 = arith.constant 0 : i32
    %c0_i32_0 = arith.constant 0 : i32
    return %arg0, %c0_i32 : i32, i32
  }
}

</mosaic_0001>

<bundles_post_ra>
// kernel: tpu_custom_call.1
= control target key start
LH: loop header
LB: loop body
LE: loop exit
PB: predicated region body
PF: predicated region fallthrough
CT: control target
= control target key end

     0   :  { %7 = vsyncpa [#allocation3], 0  ;;  %s258_s0 = inlined_call_operand.hbm [shape: f32[8,512], index: 0, kind: input, shape index: {}]   ;;  %s259_s1 = inlined_call_operand.hbm [shape: f32[8,512], index: 1, kind: input, shape index: {}]   ;;  %s260_s2 = inlined_call_operand.hbm [shape: f32[8,512], index: 2, kind: output, shape index: {}]  }
   0x1   :  { %8 = vsyncpa [#allocation6], 0 }
   0x2   :  { %9 = vsyncpa [#allocation4], 0  ;;  %s222_s9 = smov [#allocation2]   ;;  %s223_s11 = smov [#allocation5]  }
   0x3   :  { %s16_s10 = sshll.u32 %s222_s9, 4  ;;  %s26_s12 = sshll.u32 %s223_s11, 4  ;;  %s17_s10 = int_to_ptr.vmem [resolvable:$true] %s16_s10  ;;  %s27_s12 = int_to_ptr.vmem [resolvable:$true] %s26_s12 }
   0x4   :  { %s164_s13 = scalar_lea.vmem %s17_s10, 512  ;;  %p169_p1 = scmp.lt.s32.totalorder %s17_s10, %s17_s10 }
   0x5   :  { %p165_p0 = scmp.ne.s32.totalorder %s17_s10, %s164_s13  ;;  %p170_p2 = scmp.lt.s32.totalorder %s164_s13, %s164_s13 }
   0x7   :  { %p171_p3 = por %p170_p2, %p169_p1 }
   0x9   :  { %p172_p4 = pnand %p171_p3, %p165_p0 }
   0xb   :  { %175 = shalt.err (!%p172_p4)
}
   0xc   :  { %19 = dma.hbm_to_vmem [thread:$0]  %s258_s0, 512, %s17_s10, [#allocation3]  }
   0xd   :  { %s184_s16 = scalar_lea.vmem %s27_s12, 512  ;;  %p189_p6 = scmp.lt.s32.totalorder %s27_s12, %s27_s12 }
   0xe   :  { %p185_p5 = scmp.ne.s32.totalorder %s27_s12, %s184_s16  ;;  %p190_p7 = scmp.lt.s32.totalorder %s184_s16, %s184_s16 }
  0x10   :  { %p191_p8 = por %p190_p7, %p189_p6 }
  0x12   :  { %p192_p9 = pnand %p191_p8, %p185_p5 }
  0x14   :  { %195 = shalt.err (!%p192_p9)
}
  0x15   :  { %29 = dma.hbm_to_vmem [thread:$0]  %s259_s1, 512, %s27_s12, [#allocation6]  }
  0x16   :  { %216 = dma.done.wait [#allocation3], 512  }
  0x17   :  { %217 = vsyncadd [#allocation3], 4294966784 }
  0x18   :  { %218 = dma.done.wait [#allocation6], 512  }
  0x19   :  { %219 = vsyncadd [#allocation6], 4294966784  ;;  %v36_v0 = vld [vmem:[#allocation5] sm:$0xff]  ;;  %v37_v2 = vld [vmem:[#allocation5 + $0x8] sm:$0xff]  ;;  %s224_s0 = smov [#allocation7]  }
  0x1a   :  { %v40_v1 = vld [vmem:[#allocation2] sm:$0xff]  ;;  %v41_v4 = vld [vmem:[#allocation2 + $0x8] sm:$0xff]  ;;  %v38_v5 = vld [vmem:[#allocation5 + $0x10] sm:$0xff]  ;;  %s123_s1 = sshll.u32 %s224_s0, 4  ;;  %s124_s1 = int_to_ptr.vmem [resolvable:$true] %s123_s1 }
  0x1b   :  { %v44_v3 = vsub.f32 %v36_v0, %v40_v1  ;;  %v42_v6 = vld [vmem:[#allocation2 + $0x10] sm:$0xff]  ;;  %v45_v7 = vsub.f32 %v37_v2, %v41_v4  ;;  %v39_v10 = vld [vmem:[#allocation5 + $0x18] sm:$0xff]  ;;  %s196_s19 = scalar_lea.vmem %s124_s1, 512  ;;  %p201_p11 = scmp.lt.s32.totalorder %s124_s1, %s124_s1 }
  0x1c   :  { %v46_v8 = vsub.f32 %v38_v5, %v42_v6  ;;  %v43_v11 = vld [vmem:[#allocation2 + $0x18] sm:$0xff]  ;;  %p197_p10 = scmp.ne.s32.totalorder %s124_s1, %s196_s19  ;;  %p202_p12 = scmp.lt.s32.totalorder %s196_s19, %s196_s19 }
  0x1d   :  { %v48_v9 = vand.u32 2147483647, %v44_v3  ;;  %v49_v12 = vand.u32 2147483647, %v45_v7  ;;  %v47_v15 = vsub.f32 %v39_v10, %v43_v11 }
  0x1e   :  { %v246_v14 = vand.u32 2147483647, %v46_v8  ;;  %p203_p13 = por %p202_p12, %p201_p11 }
  0x1f   :  { %v69_v13 = vmul.f32 0.5, %v48_v9  ;;  %v70_v17 = vmul.f32 0.5, %v49_v12  ;;  %v51_v20 = vand.u32 2147483647, %v47_v15  ;;  %v133_v24 = vadd.f32 11.501114, %v48_v9 }
  0x20   :  { %v71_v19 = vmul.f32 0.5, %v246_v14  ;;  %v52_v26 = vmul.f32 298.50748, %v48_v9  ;;  %v134_v27 = vadd.f32 11.501114, %v49_v12  ;;  %vm97_vm0 = vcmp.gt.f32.partialorder %v48_v9, 10.0  ;;  %p204_p0 = pnand %p203_p13, %p197_p10 }
  0x21   :  { %v73_v16 = vadd.f32 1.0, %v69_v13  ;;  %v74_v18 = vadd.f32 1.0, %v70_v17  ;;  %v72_v22 = vmul.f32 0.5, %v51_v20  ;;  %v53_v30 = vmul.f32 298.50748, %v49_v12 }
  0x22   :  { %v75_v21 = vadd.f32 1.0, %v71_v19  ;;  %v137_v31 = vadd.f32 -0.029850746, %v133_v24  ;;  %v56_v34 = vmul.f32 %v52_v26, %v48_v9  ;;  %vm93_vm1 = vcmp.lt.f32.partialorder %v48_v9, 0.01 }
  0x23   :  { %148 = vlog2.f32 %v73_v16  ;;  %v76_v23 = vadd.f32 1.0, %v72_v22  ;;  %v138_v35 = vadd.f32 -0.029850746, %v134_v27  ;;  %v135_v36 = vadd.f32 11.501114, %v246_v14 }
  0x24   :  { %150 = vlog2.f32 %v74_v18  ;;  %v54_v40 = vmul.f32 298.50748, %v246_v14  ;;  %v57_v41 = vmul.f32 %v53_v30, %v49_v12  ;;  %vm98_vm2 = vcmp.gt.f32.partialorder %v49_v12, 10.0 }
  0x25   :  { %152 = vlog2.f32 %v75_v21  ;;  %v136_v43 = vadd.f32 11.501114, %v51_v20  ;;  %vm94_vm3 = vcmp.lt.f32.partialorder %v49_v12, 0.01  ;;  %v55_v47 = vmul.f32 298.50748, %v51_v20 }
  0x26   :  { %154 = vlog2.f32 %v76_v23  ;;  %v139_v49 = vadd.f32 -0.029850746, %v135_v36  ;;  %v58_v53 = vmul.f32 %v54_v40, %v246_v14  ;;  %vm95_vm4 = vcmp.lt.f32.partialorder %v246_v14, 0.01 }
  0x27   :  { %vm99_vm5 = vcmp.gt.f32.partialorder %v246_v14, 10.0  ;;  %v140_v56 = vadd.f32 -0.029850746, %v136_v43  ;;  %v59_v58 = vmul.f32 %v55_v47, %v51_v20  ;;  %vm100_vm6 = vcmp.gt.f32.partialorder %v51_v20, 10.0 }
  0x28   :  { %vm96_vm7 = vcmp.lt.f32.partialorder %v51_v20, 0.01 }
  0x30   :  { %v149_v25 = vpop.eup %148 }
  0x31   :  { %v78_v28 = vmul.f32 0.6931472, %v149_v25  ;;  %v151_v29 = vpop.eup %150 }
  0x32   :  { %v80_v33 = vmul.f32 0.6931472, %v151_v29  ;;  %v153_v37 = vpop.eup %152 }
  0x33   :  { %v85_v32 = vmul.f32 12.0, %v78_v28  ;;  %v82_v42 = vmul.f32 0.6931472, %v153_v37  ;;  %v155_v44 = vpop.eup %154 }
  0x34   :  { %v86_v39 = vmul.f32 12.0, %v80_v33  ;;  %v84_v51 = vmul.f32 0.6931472, %v155_v44 }
  0x35   :  { %v141_v38 = vadd.f32 -0.029850746, %v85_v32  ;;  %v87_v50 = vmul.f32 12.0, %v82_v42 }
  0x36   :  { %v142_v46 = vadd.f32 -0.029850746, %v86_v39  ;;  %v88_v57 = vmul.f32 12.0, %v84_v51 }
  0x37   :  { %v101_v45 = vsel %vm97_vm0, %v137_v31, %v141_v38  ;;  %v143_v55 = vadd.f32 -0.029850746, %v87_v50 }
  0x38   :  { %v105_v48 = vsel %vm93_vm1, %v56_v34, %v101_v45  ;;  %v102_v52 = vsel %vm98_vm2, %v138_v35, %v142_v46  ;;  %v144_v60 = vadd.f32 -0.029850746, %v88_v57 }
  0x39   :  { %113 = vst [vmem:[#allocation7] sm:$0xff] %v105_v48  ;;  %v106_v54 = vsel %vm94_vm3, %v57_v41, %v102_v52  ;;  %v103_v59 = vsel %vm99_vm5, %v139_v49, %v143_v55 }
  0x3a   :  { %114 = vst [vmem:[#allocation7 + $0x8] sm:$0xff] %v106_v54  ;;  %v107_v61 = vsel %vm95_vm4, %v58_v53, %v103_v59  ;;  %v104_v62 = vsel %vm100_vm6, %v140_v56, %v144_v60 }
  0x3b   :  { %115 = vst [vmem:[#allocation7 + $0x10] sm:$0xff] %v107_v61  ;;  %v108_v63 = vsel %vm96_vm7, %v59_v58, %v104_v62 }
  0x3c   :  { %116 = vst [vmem:[#allocation7 + $0x18] sm:$0xff] %v108_v63 }
  0x3d   :  { %207 = shalt.err (!%p204_p0)
}
  0x3e   :  { %126 = dma.vmem_to_hbm [thread:$0]  %s124_s1, 512, %s260_s2, [#allocation4]  }
  0x3f   :  { %220 = dma.done.wait [#allocation4], 512  }
  0x40   :  { %221 = vsyncadd [#allocation4], 4294966784 }
  0x41   :  { %130 = vsyncpa [#allocation3], 1 }
  0x42   :  { %131 = vsyncpa [#allocation6], 1 }
  0x43   :  { %132 = vsyncpa [#allocation4], 1 }

</bundles_post_ra>
